<compile_context>
chip_gen: v7x
topology: tpu7x:2x2x1
jax: 0.10.0
libtpu: 0.0.40
codegen_flags: <defaults>
</compile_context>

<pallas_src>
import functools
import math

import numpy as np
import jax
import jax.numpy as jnp
from jax import lax
from jax.experimental import pallas as pl
from jax.experimental.pallas import tpu as pltpu

_LN_EPS = 1e-5  # torch LayerNorm default used by the module


@functools.lru_cache(maxsize=None)
def _dwt_band_matrix(tn: int, stride: int) -> np.ndarray:
    """Tiny banded decimation matrix D (stride*tn, tn), cached per (tn, stride).

    With y = x*x, (y @ D)[., t] = 0.5*(y[., t*stride] - y[., t*stride+1])
                                = x_low * x_high  for the haar filters (element_product).
    """
    D = np.zeros((stride * tn, tn), dtype=np.float32)
    t = np.arange(tn)
    D[t * stride, t] = 0.5
    D[t * stride + 1, t] = -0.5
    return D


def _pick_time_tile(T2: int) -> int:
    for cand in (512, 256, 128):            # lane-dense tiles when T2 allows it
        if T2 % cand == 0:
            return cand
    return T2                               # small-T fallback: single full-extent tile


def _dwt_ln_qkv_kernel(x_ref, md_ref, dmat_ref, lnw_ref, lnb_ref, w_ref, b_ref,
                       q_ref, k_ref, v_ref):
    """Fused: haar DWT (element_product) + mask + LayerNorm + 1x1 q/k/v convs."""
    x = x_ref[0].astype(jnp.float32)              # (C, stride*tn)  in-kernel cast
    md = md_ref[0].astype(jnp.float32)            # (1, tn)         downsampled mask
    y = x * x                                     # VPU
    dwt = jnp.dot(y, dmat_ref[...],
                  preferred_element_type=jnp.float32) * md          # (C, tn)
    # LayerNorm statistics over channels; the three MaskDWT_1D modules are
    # parameter-free and identical, so dwt (and mu/sigma) are shared by q/k/v.
    mu = jnp.mean(dwt, axis=0, keepdims=True)
    r = dwt - mu
    sig = jnp.mean(r * r, axis=0, keepdims=True)
    xn = r * lax.rsqrt(sig + _LN_EPS)             # (C, tn)
    for idx, o_ref in enumerate((q_ref, k_ref, v_ref)):
        h = xn * lnw_ref[idx].astype(jnp.float32) + lnb_ref[idx].astype(jnp.float32)
        o = jnp.dot(w_ref[idx].astype(jnp.float32), h,
                    preferred_element_type=jnp.float32) + b_ref[idx].astype(jnp.float32)
        o_ref[0] = o.astype(o_ref.dtype)


def _attn_proj_kernel(q_ref, k_ref, v_ref, md_ref, wp_ref, bp_ref, out_ref, acc_ref,
                      *, n_head, scale):
    """Per-(batch, head) masked attention with the output projection folded in."""
    hh = pl.program_id(1)

    @pl.when(hh == 0)
    def _():
        acc_ref[...] = jnp.zeros_like(acc_ref)

    qh = q_ref[0, 0].astype(jnp.float32) * scale      # (T2, d)  (q * scale, as in torch)
    kh = k_ref[0].astype(jnp.float32)                 # (d, T2)
    vh = v_ref[0].astype(jnp.float32)                 # (d, T2)
    md = md_ref[0].astype(jnp.float32)                # (1, T2)

    s = jnp.dot(qh, kh, preferred_element_type=jnp.float32)           # (T2, T2)
    s = s - jnp.max(s, axis=-1, keepdims=True)
    p = jnp.exp(s)
    p = p / jnp.sum(p, axis=-1, keepdims=True)                        # softmax over keys

    vm = vh * md                                                      # kv_mask on values
    # oh[c, i] = sum_j vm[c, j] * p[i, j]
    oh = lax.dot_general(vm, p, (((1,), (1,)), ((), ())),
                         preferred_element_type=jnp.float32)          # (d, T2)
    # Fold output projection: acc += Wp[:, hh*d:(hh+1)*d] @ oh
    acc_ref[...] += jnp.dot(wp_ref[0].astype(jnp.float32), oh,
                            preferred_element_type=jnp.float32)       # (C, T2)

    @pl.when(hh == n_head - 1)
    def _():
        out_ref[0] = ((acc_ref[...] + bp_ref[...].astype(jnp.float32)) * md
                      ).astype(out_ref.dtype)


def masked_mhca_forward(x, mask, params, *, n_head, stride):
    """MaskedMHCA forward (n_qx_stride > 1 branch: DWT downsampling, is_stack=False).

    x: (B, C, T), mask: (B, 1, T) bool. Returns (out (B, C, T//stride), qx_mask bool).
    """
    # TODO(synk): is_stack=True (n_qx_stride == 1 branch: concat of x_low/x_high along time).
    # TODO(synk): stride == 1 DWT path (needs nearest interpolation T-1 -> T).
    # attn_pdrop / proj_pdrop are 0.0 in the module -> dropout is the identity here.
    B, C, T = x.shape
    assert C % n_head == 0
    d = C // n_head
    assert d % 8 == 0, "head dim must be a multiple of 8 (sublane-aligned head blocks)"
    assert stride >= 2 and stride % 2 == 0 and T % stride == 0
    T2 = T // stride
    scale = 1.0 / math.sqrt(d)
    in_dtype = x.dtype

    # Nearest-neighbour mask downsample (qx_mask == kv_mask): index j -> j*stride.
    md = mask[:, :, ::stride].astype(jnp.float32)                    # (B, 1, T2)

    tn = _pick_time_tile(T2)
    nt = T2 // tn
    dmat = jnp.asarray(_dwt_band_matrix(tn, stride))                 # (stride*tn, tn)

    # ---- kernel 1: DWT + mask + LayerNorm + 1x1 q/k/v convs ------------------------
    q, k, v = pl.pallas_call(
        _dwt_ln_qkv_kernel,
        out_shape=(jax.ShapeDtypeStruct((B, C, T2), in_dtype),) * 3,
        grid_spec=pltpu.PrefetchScalarGridSpec(
            num_scalar_prefetch=0,
            grid=(B, nt),
            in_specs=[
                pl.BlockSpec((1, C, stride * tn), lambda b, j: (b, 0, j)),  # x
                pl.BlockSpec((1, 1, tn), lambda b, j: (b, 0, j)),           # md
                pl.BlockSpec((stride * tn, tn), lambda b, j: (0, 0)),       # D (tiny)
                pl.BlockSpec((3, C, 1), lambda b, j: (0, 0, 0)),            # LN weight
                pl.BlockSpec((3, C, 1), lambda b, j: (0, 0, 0)),            # LN bias
                pl.BlockSpec((3, C, C), lambda b, j: (0, 0, 0)),            # W_q/k/v
                pl.BlockSpec((3, C, 1), lambda b, j: (0, 0, 0)),            # b_q/k/v
            ],
            out_specs=[pl.BlockSpec((1, C, tn), lambda b, j: (b, 0, j))] * 3,
        ),
        compiler_params=pltpu.CompilerParams(
            dimension_semantics=("parallel", "parallel")),
    )(x, md, dmat, params['ln_w'], params['ln_b'], params['w_qkv'], params['b_qkv'])

    # Mirror torch's view(B, h, d, T2).transpose(2, 3) for q only (k, v are consumed in
    # their native (d, T2) per-head layout so no transposes are needed in-kernel).
    q_t = q.reshape(B, n_head, d, T2).transpose(0, 1, 3, 2)          # (B, h, T2, d)

    # Per-head slices of the projection weight: wp_h[hh] == Wp[:, hh*d:(hh+1)*d].
    wp_h = params['w_proj'].reshape(C, n_head, d).transpose(1, 0, 2)  # (h, C, d)
    bp = params['b_proj'].reshape(C, 1)

    # ---- kernel 2: masked attention + fused output projection + qx_mask ------------
    # TODO(synk): flash-style T2 tiling for very long sequences (full T2 block here).
    out = pl.pallas_call(
        functools.partial(_attn_proj_kernel, n_head=n_head, scale=scale),
        out_shape=jax.ShapeDtypeStruct((B, C, T2), in_dtype),
        grid_spec=pltpu.PrefetchScalarGridSpec(
            num_scalar_prefetch=0,
            grid=(B, n_head),
            in_specs=[
                pl.BlockSpec((1, 1, T2, d), lambda b, h: (b, h, 0, 0)),   # q (time-major)
                pl.BlockSpec((1, d, T2), lambda b, h: (b, h, 0)),         # k
                pl.BlockSpec((1, d, T2), lambda b, h: (b, h, 0)),         # v
                pl.BlockSpec((1, 1, T2), lambda b, h: (b, 0, 0)),         # mask
                pl.BlockSpec((1, C, d), lambda b, h: (h, 0, 0)),          # Wp per head
                pl.BlockSpec((C, 1), lambda b, h: (0, 0)),                # proj bias
            ],
            out_specs=pl.BlockSpec((1, C, T2), lambda b, h: (b, 0, 0)),
            scratch_shapes=[pltpu.VMEM((C, T2), jnp.float32)],
        ),
        compiler_params=pltpu.CompilerParams(
            dimension_semantics=("parallel", "arbitrary")),
    )(q_t, k, v, md, wp_h, bp)

    return out, md.astype(jnp.bool_)


def _reference_forward(x, mask, params, n_head, stride):
    """Pure-numpy transcription of MaskedMHCA.forward (n_qx_stride > 1, haar/db1)."""
    x = np.asarray(x, np.float32)
    B, C, T = x.shape
    T2 = T // stride
    d = C // n_head
    md = np.asarray(mask)[:, :, ::stride].astype(np.float32)         # (B, 1, T2)

    inv_sqrt2 = 1.0 / np.sqrt(2.0)
    xe = x[:, :, 0::stride]
    xo = x[:, :, 1::stride]
    lo = (xe + xo) * inv_sqrt2
    hi = (xe - xo) * inv_sqrt2
    dwt = lo * hi * md                                               # element_product + mask

    def ln_proj(i):
        mu = dwt.mean(axis=1, keepdims=True)
        r = dwt - mu
        sig = (r * r).mean(axis=1, keepdims=True)
        xn = r / np.sqrt(sig + _LN_EPS)
        h = xn * params['ln_w'][i] + params['ln_b'][i]
        return np.einsum('oc,bct->bot', params['w_qkv'][i], h) + params['b_qkv'][i]

    q, k, v = ln_proj(0), ln_proj(1), ln_proj(2)
    qh = q.reshape(B, n_head, d, T2).transpose(0, 1, 3, 2)
    kh = k.reshape(B, n_head, d, T2).transpose(0, 1, 3, 2)
    vh = v.reshape(B, n_head, d, T2).transpose(0, 1, 3, 2)

    scale = 1.0 / np.sqrt(d)
    att = np.einsum('bhid,bhjd->bhij', qh * scale, kh)
    att = att - att.max(axis=-1, keepdims=True)
    att = np.exp(att)
    att = att / att.sum(axis=-1, keepdims=True)
    vm = vh * md[:, :, :, None]
    o = np.einsum('bhij,bhjd->bhid', att, vm)
    o = o.transpose(0, 1, 3, 2).reshape(B, C, T2)
    out = np.einsum('oc,bct->bot', params['w_proj'], o) + params['b_proj'][None, :, None]
    out = out * md
    return out, md.astype(bool)


if __name__ == "__main__":
    B, C, T = 2, 32, 32
    n_head, stride = 4, 2            # MaskedMHCA with n_qx_stride = n_kv_stride = 2

    key = jax.random.PRNGKey(0)
    ks = jax.random.split(key, 7)
    x = jax.random.normal(ks[0], (B, C, T), dtype=jnp.float32)
    lengths = jnp.array([T, 20])
    mask = jnp.arange(T)[None, None, :] < lengths[:, None, None]     # (B, 1, T) bool

    params = {
        'ln_w': 1.0 + 0.1 * jax.random.normal(ks[1], (3, C, 1), jnp.float32),
        'ln_b': 0.1 * jax.random.normal(ks[2], (3, C, 1), jnp.float32),
        'w_qkv': jax.random.normal(ks[3], (3, C, C), jnp.float32) / math.sqrt(C),
        'b_qkv': 0.1 * jax.random.normal(ks[4], (3, C, 1), jnp.float32),
        'w_proj': jax.random.normal(ks[5], (C, C), jnp.float32) / math.sqrt(C),
        'b_proj': 0.1 * jax.random.normal(ks[6], (C,), jnp.float32),
    }

    fwd = jax.jit(functools.partial(masked_mhca_forward, n_head=n_head, stride=stride))
    out, qx_mask = fwd(x, mask, params)
    out = jax.block_until_ready(out)
    qx_mask = jax.block_until_ready(qx_mask)

    ref_out, ref_mask = _reference_forward(
        np.asarray(x), np.asarray(mask),
        {kk: np.asarray(vv) for kk, vv in params.items()}, n_head, stride)

    assert out.shape == ref_out.shape == (B, C, T // stride)
    assert qx_mask.shape == ref_mask.shape == (B, 1, T // stride)
    assert np.allclose(np.asarray(out), ref_out, rtol=5e-4, atol=1e-4), \
        float(np.abs(np.asarray(out) - ref_out).max())
    assert np.array_equal(np.asarray(qx_mask), ref_mask)
    print("KERNEL_OK")
</pallas_src>

<mosaic_0001>
module attributes {stable_mosaic.version = 11 : i64} {
  func.func @_dwt_ln_qkv_kernel(%arg0: i32, %arg1: i32, %arg2: memref<1x32x32xf32, #tpu.memory_space<vmem>>, %arg3: memref<1x1x16xf32, #tpu.memory_space<vmem>>, %arg4: memref<32x16xf32, #tpu.memory_space<vmem>>, %arg5: memref<3x32x1xf32, #tpu.memory_space<vmem>>, %arg6: memref<3x32x1xf32, #tpu.memory_space<vmem>>, %arg7: memref<3x32x32xf32, #tpu.memory_space<vmem>>, %arg8: memref<3x32x1xf32, #tpu.memory_space<vmem>>, %arg9: memref<1x32x16xf32, #tpu.memory_space<vmem>>, %arg10: memref<1x32x16xf32, #tpu.memory_space<vmem>>, %arg11: memref<1x32x16xf32, #tpu.memory_space<vmem>>) attributes {dimension_semantics = [#tpu.dimension_semantics<parallel>, #tpu.dimension_semantics<parallel>], iteration_bounds = array<i64: 2, 1>, scalar_prefetch = 0 : i64, scratch_operands = 0 : i64, tpu.core_type = #tpu.core_type<tc>, window_params = [{transform_indices = @transform_0, window_bounds = array<i64: 1, 32, 32>}, {transform_indices = @transform_1, window_bounds = array<i64: 1, 1, 16>}, {pipeline_mode = #tpu.pipeline_mode<synchronous>, transform_indices = @transform_2, window_bounds = array<i64: 32, 16>}, {pipeline_mode = #tpu.pipeline_mode<synchronous>, transform_indices = @transform_3, window_bounds = array<i64: 3, 32, 1>}, {pipeline_mode = #tpu.pipeline_mode<synchronous>, transform_indices = @transform_4, window_bounds = array<i64: 3, 32, 1>}, {pipeline_mode = #tpu.pipeline_mode<synchronous>, transform_indices = @transform_5, window_bounds = array<i64: 3, 32, 32>}, {pipeline_mode = #tpu.pipeline_mode<synchronous>, transform_indices = @transform_6, window_bounds = array<i64: 3, 32, 1>}, {transform_indices = @transform_7, window_bounds = array<i64: 1, 32, 16>}, {transform_indices = @transform_8, window_bounds = array<i64: 1, 32, 16>}, {transform_indices = @transform_9, window_bounds = array<i64: 1, 32, 16>}]} {
    %c0 = arith.constant 0 : index
    %c0_0 = arith.constant 0 : index
    %c0_1 = arith.constant 0 : index
    %0 = vector.load %arg2[%c0, %c0_0, %c0_1] : memref<1x32x32xf32, #tpu.memory_space<vmem>>, vector<1x32x32xf32>
    %1 = vector.shape_cast %0 : vector<1x32x32xf32> to vector<32x32xf32>
    %c0_2 = arith.constant 0 : index
    %c0_3 = arith.constant 0 : index
    %c0_4 = arith.constant 0 : index
    %2 = vector.load %arg3[%c0_2, %c0_3, %c0_4] : memref<1x1x16xf32, #tpu.memory_space<vmem>>, vector<1x1x16xf32>
    %3 = vector.shape_cast %2 : vector<1x1x16xf32> to vector<1x16xf32>
    %4 = arith.mulf %1, %1 : vector<32x32xf32>
    %c0_5 = arith.constant 0 : index
    %c0_6 = arith.constant 0 : index
    %5 = vector.load %arg4[%c0_5, %c0_6] : memref<32x16xf32, #tpu.memory_space<vmem>>, vector<32x16xf32>
    %cst = arith.constant dense<0.000000e+00> : vector<32x16xf32>
    %6 = tpu.matmul %4, %5, %cst {dimension_numbers = #tpu.dot_dimension_numbers<[1], [0], [0], [1], [0, 0, 1, 1], [], []>} : vector<32x32xf32>, vector<32x16xf32>, vector<32x16xf32> -> vector<32x16xf32>
    %7 = vector.broadcast %3 : vector<1x16xf32> to vector<32x16xf32>
    %8 = arith.mulf %6, %7 : vector<32x16xf32>
    %cst_7 = arith.constant dense<0.000000e+00> : vector<16xf32>
    %9 = vector.multi_reduction <add>, %8, %cst_7 [0] : vector<32x16xf32> to vector<16xf32>
    %10 = vector.shape_cast %9 : vector<16xf32> to vector<1x16xf32>
    %cst_8 = arith.constant 3.200000e+01 : f32
    %11 = vector.broadcast %cst_8 : f32 to vector<1x16xf32>
    %12 = arith.divf %10, %11 : vector<1x16xf32>
    %13 = vector.broadcast %12 : vector<1x16xf32> to vector<32x16xf32>
    %14 = arith.subf %8, %13 : vector<32x16xf32>
    %15 = arith.mulf %14, %14 : vector<32x16xf32>
    %cst_9 = arith.constant dense<0.000000e+00> : vector<16xf32>
    %16 = vector.multi_reduction <add>, %15, %cst_9 [0] : vector<32x16xf32> to vector<16xf32>
    %17 = vector.shape_cast %16 : vector<16xf32> to vector<1x16xf32>
    %cst_10 = arith.constant 3.200000e+01 : f32
    %18 = vector.broadcast %cst_10 : f32 to vector<1x16xf32>
    %19 = arith.divf %17, %18 : vector<1x16xf32>
    %cst_11 = arith.constant 9.99999974E-6 : f32
    %20 = vector.broadcast %cst_11 : f32 to vector<1x16xf32>
    %21 = arith.addf %19, %20 : vector<1x16xf32>
    %22 = math.rsqrt %21 : vector<1x16xf32>
    %23 = vector.broadcast %22 : vector<1x16xf32> to vector<32x16xf32>
    %24 = arith.mulf %14, %23 : vector<32x16xf32>
    %c0_12 = arith.constant 0 : index
    %c0_13 = arith.constant 0 : index
    %c0_14 = arith.constant 0 : index
    %25 = vector.load %arg5[%c0_12, %c0_13, %c0_14] : memref<3x32x1xf32, #tpu.memory_space<vmem>>, vector<1x32x1xf32>
    %26 = vector.shape_cast %25 : vector<1x32x1xf32> to vector<32x1xf32>
    %27 = vector.broadcast %26 : vector<32x1xf32> to vector<32x16xf32>
    %28 = arith.mulf %24, %27 : vector<32x16xf32>
    %c0_15 = arith.constant 0 : index
    %c0_16 = arith.constant 0 : index
    %c0_17 = arith.constant 0 : index
    %29 = vector.load %arg6[%c0_15, %c0_16, %c0_17] : memref<3x32x1xf32, #tpu.memory_space<vmem>>, vector<1x32x1xf32>
    %30 = vector.shape_cast %29 : vector<1x32x1xf32> to vector<32x1xf32>
    %31 = vector.broadcast %30 : vector<32x1xf32> to vector<32x16xf32>
    %32 = arith.addf %28, %31 : vector<32x16xf32>
    %c0_18 = arith.constant 0 : index
    %c0_19 = arith.constant 0 : index
    %c0_20 = arith.constant 0 : index
    %33 = vector.load %arg7[%c0_18, %c0_19, %c0_20] : memref<3x32x32xf32, #tpu.memory_space<vmem>>, vector<1x32x32xf32>
    %34 = vector.shape_cast %33 : vector<1x32x32xf32> to vector<32x32xf32>
    %cst_21 = arith.constant dense<0.000000e+00> : vector<32x16xf32>
    %35 = tpu.matmul %34, %32, %cst_21 {dimension_numbers = #tpu.dot_dimension_numbers<[1], [0], [0], [1], [0, 0, 1, 1], [], []>} : vector<32x32xf32>, vector<32x16xf32>, vector<32x16xf32> -> vector<32x16xf32>
    %c0_22 = arith.constant 0 : index
    %c0_23 = arith.constant 0 : index
    %c0_24 = arith.constant 0 : index
    %36 = vector.load %arg8[%c0_22, %c0_23, %c0_24] : memref<3x32x1xf32, #tpu.memory_space<vmem>>, vector<1x32x1xf32>
    %37 = vector.shape_cast %36 : vector<1x32x1xf32> to vector<32x1xf32>
    %38 = vector.broadcast %37 : vector<32x1xf32> to vector<32x16xf32>
    %39 = arith.addf %35, %38 : vector<32x16xf32>
    %c0_25 = arith.constant 0 : index
    %c0_26 = arith.constant 0 : index
    %c0_27 = arith.constant 0 : index
    %40 = vector.load %arg9[%c0_25, %c0_26, %c0_27] : memref<1x32x16xf32, #tpu.memory_space<vmem>>, vector<1x32x16xf32>
    %41 = vector.shape_cast %40 : vector<1x32x16xf32> to vector<32x16xf32>
    %42 = vector.shape_cast %39 : vector<32x16xf32> to vector<1x32x16xf32>
    tpu.vector_store %arg9[%c0_25, %c0_26, %c0_27], %42 {strides = array<i32>} : memref<1x32x16xf32, #tpu.memory_space<vmem>>, vector<1x32x16xf32>,
    %c1 = arith.constant 1 : index
    %c0_28 = arith.constant 0 : index
    %c0_29 = arith.constant 0 : index
    %43 = vector.load %arg5[%c1, %c0_28, %c0_29] : memref<3x32x1xf32, #tpu.memory_space<vmem>>, vector<1x32x1xf32>
    %44 = vector.shape_cast %43 : vector<1x32x1xf32> to vector<32x1xf32>
    %45 = vector.broadcast %44 : vector<32x1xf32> to vector<32x16xf32>
    %46 = arith.mulf %24, %45 : vector<32x16xf32>
    %c1_30 = arith.constant 1 : index
    %c0_31 = arith.constant 0 : index
    %c0_32 = arith.constant 0 : index
    %47 = vector.load %arg6[%c1_30, %c0_31, %c0_32] : memref<3x32x1xf32, #tpu.memory_space<vmem>>, vector<1x32x1xf32>
    %48 = vector.shape_cast %47 : vector<1x32x1xf32> to vector<32x1xf32>
    %49 = vector.broadcast %48 : vector<32x1xf32> to vector<32x16xf32>
    %50 = arith.addf %46, %49 : vector<32x16xf32>
    %c1_33 = arith.constant 1 : index
    %c0_34 = arith.constant 0 : index
    %c0_35 = arith.constant 0 : index
    %51 = vector.load %arg7[%c1_33, %c0_34, %c0_35] : memref<3x32x32xf32, #tpu.memory_space<vmem>>, vector<1x32x32xf32>
    %52 = vector.shape_cast %51 : vector<1x32x32xf32> to vector<32x32xf32>
    %cst_36 = arith.constant dense<0.000000e+00> : vector<32x16xf32>
    %53 = tpu.matmul %52, %50, %cst_36 {dimension_numbers = #tpu.dot_dimension_numbers<[1], [0], [0], [1], [0, 0, 1, 1], [], []>} : vector<32x32xf32>, vector<32x16xf32>, vector<32x16xf32> -> vector<32x16xf32>
    %c1_37 = arith.constant 1 : index
    %c0_38 = arith.constant 0 : index
    %c0_39 = arith.constant 0 : index
    %54 = vector.load %arg8[%c1_37, %c0_38, %c0_39] : memref<3x32x1xf32, #tpu.memory_space<vmem>>, vector<1x32x1xf32>
    %55 = vector.shape_cast %54 : vector<1x32x1xf32> to vector<32x1xf32>
    %56 = vector.broadcast %55 : vector<32x1xf32> to vector<32x16xf32>
    %57 = arith.addf %53, %56 : vector<32x16xf32>
    %c0_40 = arith.constant 0 : index
    %c0_41 = arith.constant 0 : index
    %c0_42 = arith.constant 0 : index
    %58 = vector.load %arg10[%c0_40, %c0_41, %c0_42] : memref<1x32x16xf32, #tpu.memory_space<vmem>>, vector<1x32x16xf32>
    %59 = vector.shape_cast %58 : vector<1x32x16xf32> to vector<32x16xf32>
    %60 = vector.shape_cast %57 : vector<32x16xf32> to vector<1x32x16xf32>
    tpu.vector_store %arg10[%c0_40, %c0_41, %c0_42], %60 {strides = array<i32>} : memref<1x32x16xf32, #tpu.memory_space<vmem>>, vector<1x32x16xf32>,
    %c2 = arith.constant 2 : index
    %c0_43 = arith.constant 0 : index
    %c0_44 = arith.constant 0 : index
    %61 = vector.load %arg5[%c2, %c0_43, %c0_44] : memref<3x32x1xf32, #tpu.memory_space<vmem>>, vector<1x32x1xf32>
    %62 = vector.shape_cast %61 : vector<1x32x1xf32> to vector<32x1xf32>
    %63 = vector.broadcast %62 : vector<32x1xf32> to vector<32x16xf32>
    %64 = arith.mulf %24, %63 : vector<32x16xf32>
    %c2_45 = arith.constant 2 : index
    %c0_46 = arith.constant 0 : index
    %c0_47 = arith.constant 0 : index
    %65 = vector.load %arg6[%c2_45, %c0_46, %c0_47] : memref<3x32x1xf32, #tpu.memory_space<vmem>>, vector<1x32x1xf32>
    %66 = vector.shape_cast %65 : vector<1x32x1xf32> to vector<32x1xf32>
    %67 = vector.broadcast %66 : vector<32x1xf32> to vector<32x16xf32>
    %68 = arith.addf %64, %67 : vector<32x16xf32>
    %c2_48 = arith.constant 2 : index
    %c0_49 = arith.constant 0 : index
    %c0_50 = arith.constant 0 : index
    %69 = vector.load %arg7[%c2_48, %c0_49, %c0_50] : memref<3x32x32xf32, #tpu.memory_space<vmem>>, vector<1x32x32xf32>
    %70 = vector.shape_cast %69 : vector<1x32x32xf32> to vector<32x32xf32>
    %cst_51 = arith.constant dense<0.000000e+00> : vector<32x16xf32>
    %71 = tpu.matmul %70, %68, %cst_51 {dimension_numbers = #tpu.dot_dimension_numbers<[1], [0], [0], [1], [0, 0, 1, 1], [], []>} : vector<32x32xf32>, vector<32x16xf32>, vector<32x16xf32> -> vector<32x16xf32>
    %c2_52 = arith.constant 2 : index
    %c0_53 = arith.constant 0 : index
    %c0_54 = arith.constant 0 : index
    %72 = vector.load %arg8[%c2_52, %c0_53, %c0_54] : memref<3x32x1xf32, #tpu.memory_space<vmem>>, vector<1x32x1xf32>
    %73 = vector.shape_cast %72 : vector<1x32x1xf32> to vector<32x1xf32>
    %74 = vector.broadcast %73 : vector<32x1xf32> to vector<32x16xf32>
    %75 = arith.addf %71, %74 : vector<32x16xf32>
    %c0_55 = arith.constant 0 : index
    %c0_56 = arith.constant 0 : index
    %c0_57 = arith.constant 0 : index
    %76 = vector.load %arg11[%c0_55, %c0_56, %c0_57] : memref<1x32x16xf32, #tpu.memory_space<vmem>>, vector<1x32x16xf32>
    %77 = vector.shape_cast %76 : vector<1x32x16xf32> to vector<32x16xf32>
    %78 = vector.shape_cast %75 : vector<32x16xf32> to vector<1x32x16xf32>
    tpu.vector_store %arg11[%c0_55, %c0_56, %c0_57], %78 {strides = array<i32>} : memref<1x32x16xf32, #tpu.memory_space<vmem>>, vector<1x32x16xf32>,
    return
  }
  func.func @transform_0(%arg0: i32, %arg1: i32) -> (i32, i32, i32) {
    %c0_i32 = arith.constant 0 : i32
    %c0_i32_0 = arith.constant 0 : i32
    return %arg0, %c0_i32, %arg1 : i32, i32, i32
  }
  func.func @transform_1(%arg0: i32, %arg1: i32) -> (i32, i32, i32) {
    %c0_i32 = arith.constant 0 : i32
    %c0_i32_0 = arith.constant 0 : i32
    return %arg0, %c0_i32, %arg1 : i32, i32, i32
  }
  func.func @transform_2(%arg0: i32, %arg1: i32) -> (i32, i32) {
    %c0_i32 = arith.constant 0 : i32
    %c0_i32_0 = arith.constant 0 : i32
    %c0_i32_1 = arith.constant 0 : i32
    return %c0_i32, %c0_i32_0 : i32, i32
  }
  func.func @transform_3(%arg0: i32, %arg1: i32) -> (i32, i32, i32) {
    %c0_i32 = arith.constant 0 : i32
    %c0_i32_0 = arith.constant 0 : i32
    %c0_i32_1 = arith.constant 0 : i32
    %c0_i32_2 = arith.constant 0 : i32
    return %c0_i32, %c0_i32_0, %c0_i32_1 : i32, i32, i32
  }
  func.func @transform_4(%arg0: i32, %arg1: i32) -> (i32, i32, i32) {
    %c0_i32 = arith.constant 0 : i32
    %c0_i32_0 = arith.constant 0 : i32
    %c0_i32_1 = arith.constant 0 : i32
    %c0_i32_2 = arith.constant 0 : i32
    return %c0_i32, %c0_i32_0, %c0_i32_1 : i32, i32, i32
  }
  func.func @transform_5(%arg0: i32, %arg1: i32) -> (i32, i32, i32) {
    %c0_i32 = arith.constant 0 : i32
    %c0_i32_0 = arith.constant 0 : i32
    %c0_i32_1 = arith.constant 0 : i32
    %c0_i32_2 = arith.constant 0 : i32
    return %c0_i32, %c0_i32_0, %c0_i32_1 : i32, i32, i32
  }
  func.func @transform_6(%arg0: i32, %arg1: i32) -> (i32, i32, i32) {
    %c0_i32 = arith.constant 0 : i32
    %c0_i32_0 = arith.constant 0 : i32
    %c0_i32_1 = arith.constant 0 : i32
    %c0_i32_2 = arith.constant 0 : i32
    return %c0_i32, %c0_i32_0, %c0_i32_1 : i32, i32, i32
  }
  func.func @transform_7(%arg0: i32, %arg1: i32) -> (i32, i32, i32) {
    %c0_i32 = arith.constant 0 : i32
    %c0_i32_0 = arith.constant 0 : i32
    return %arg0, %c0_i32, %arg1 : i32, i32, i32
  }
  func.func @transform_8(%arg0: i32, %arg1: i32) -> (i32, i32, i32) {
    %c0_i32 = arith.constant 0 : i32
    %c0_i32_0 = arith.constant 0 : i32
    return %arg0, %c0_i32, %arg1 : i32, i32, i32
  }
  func.func @transform_9(%arg0: i32, %arg1: i32) -> (i32, i32, i32) {
    %c0_i32 = arith.constant 0 : i32
    %c0_i32_0 = arith.constant 0 : i32
    return %arg0, %c0_i32, %arg1 : i32, i32, i32
  }
}

module attributes {stable_mosaic.version = 11 : i64} {
  func.func @_attn_proj_kernel(%arg0: i32, %arg1: i32, %arg2: memref<1x1x16x8xf32, #tpu.memory_space<vmem>>, %arg3: memref<1x8x16xf32, #tpu.memory_space<vmem>>, %arg4: memref<1x8x16xf32, #tpu.memory_space<vmem>>, %arg5: memref<1x1x16xf32, #tpu.memory_space<vmem>>, %arg6: memref<1x32x8xf32, #tpu.memory_space<vmem>>, %arg7: memref<32x1xf32, #tpu.memory_space<vmem>>, %arg8: memref<1x32x16xf32, #tpu.memory_space<vmem>>, %arg9: memref<32x16xf32, #tpu.memory_space<vmem>>) attributes {dimension_semantics = [#tpu.dimension_semantics<parallel>, #tpu.dimension_semantics<arbitrary>], iteration_bounds = array<i64: 2, 4>, scalar_prefetch = 0 : i64, scratch_operands = 1 : i64, tpu.core_type = #tpu.core_type<tc>, window_params = [{transform_indices = @transform_0, window_bounds = array<i64: 1, 1, 16, 8>}, {transform_indices = @transform_1, window_bounds = array<i64: 1, 8, 16>}, {transform_indices = @transform_2, window_bounds = array<i64: 1, 8, 16>}, {transform_indices = @transform_3, window_bounds = array<i64: 1, 1, 16>}, {transform_indices = @transform_4, window_bounds = array<i64: 1, 32, 8>}, {pipeline_mode = #tpu.pipeline_mode<synchronous>, transform_indices = @transform_5, window_bounds = array<i64: 32, 1>}, {transform_indices = @transform_6, window_bounds = array<i64: 1, 32, 16>}]} {
    %c0_i32 = arith.constant 0 : i32
    %0 = arith.cmpi eq, %arg1, %c0_i32 : i32
    %1 = arith.extui %0 : i1 to i32
    %c0_i32_0 = arith.constant 0 : i32
    %2 = arith.cmpi ne, %1, %c0_i32_0 : i32
    scf.if %2 {
      %cst_26 = arith.constant 0.000000e+00 : f32
      %35 = vector.broadcast %cst_26 : f32 to vector<32x16xf32>
      %c0_27 = arith.constant 0 : index
      %c0_28 = arith.constant 0 : index
      %36 = vector.load %arg9[%c0_27, %c0_28] : memref<32x16xf32, #tpu.memory_space<vmem>>, vector<32x16xf32>
      tpu.vector_store %arg9[%c0_27, %c0_28], %35 {strides = array<i32>} : memref<32x16xf32, #tpu.memory_space<vmem>>, vector<32x16xf32>,
    } else {
    }
    %c0 = arith.constant 0 : index
    %c0_1 = arith.constant 0 : index
    %c0_2 = arith.constant 0 : index
    %c0_3 = arith.constant 0 : index
    %3 = vector.load %arg2[%c0, %c0_1, %c0_2, %c0_3] : memref<1x1x16x8xf32, #tpu.memory_space<vmem>>, vector<1x1x16x8xf32>
    %4 = vector.shape_cast %3 : vector<1x1x16x8xf32> to vector<16x8xf32>
    %cst = arith.constant 0.353553385 : f32
    %5 = vector.broadcast %cst : f32 to vector<16x8xf32>
    %6 = arith.mulf %4, %5 : vector<16x8xf32>
    %c0_4 = arith.constant 0 : index
    %c0_5 = arith.constant 0 : index
    %c0_6 = arith.constant 0 : index
    %7 = vector.load %arg3[%c0_4, %c0_5, %c0_6] : memref<1x8x16xf32, #tpu.memory_space<vmem>>, vector<1x8x16xf32>
    %8 = vector.shape_cast %7 : vector<1x8x16xf32> to vector<8x16xf32>
    %c0_7 = arith.constant 0 : index
    %c0_8 = arith.constant 0 : index
    %c0_9 = arith.constant 0 : index
    %9 = vector.load %arg4[%c0_7, %c0_8, %c0_9] : memref<1x8x16xf32, #tpu.memory_space<vmem>>, vector<1x8x16xf32>
    %10 = vector.shape_cast %9 : vector<1x8x16xf32> to vector<8x16xf32>
    %c0_10 = arith.constant 0 : index
    %c0_11 = arith.constant 0 : index
    %c0_12 = arith.constant 0 : index
    %11 = vector.load %arg5[%c0_10, %c0_11, %c0_12] : memref<1x1x16xf32, #tpu.memory_space<vmem>>, vector<1x1x16xf32>
    %12 = vector.shape_cast %11 : vector<1x1x16xf32> to vector<1x16xf32>
    %cst_13 = arith.constant dense<0.000000e+00> : vector<16x16xf32>
    %13 = tpu.matmul %6, %8, %cst_13 {dimension_numbers = #tpu.dot_dimension_numbers<[1], [0], [0], [1], [0, 0, 1, 1], [], []>} : vector<16x8xf32>, vector<8x16xf32>, vector<16x16xf32> -> vector<16x16xf32>
    %cst_14 = arith.constant dense<0xFF800000> : vector<16xf32>
    %14 = vector.multi_reduction <maximumf>, %13, %cst_14 [1] : vector<16x16xf32> to vector<16xf32>
    %15 = vector.shape_cast %14 : vector<16xf32> to vector<16x1xf32>
    %16 = vector.broadcast %15 : vector<16x1xf32> to vector<16x16xf32>
    %17 = arith.subf %13, %16 : vector<16x16xf32>
    %18 = math.exp %17 : vector<16x16xf32>
    %cst_15 = arith.constant dense<0.000000e+00> : vector<16xf32>
    %19 = vector.multi_reduction <add>, %18, %cst_15 [1] : vector<16x16xf32> to vector<16xf32>
    %20 = vector.shape_cast %19 : vector<16xf32> to vector<16x1xf32>
    %21 = vector.broadcast %20 : vector<16x1xf32> to vector<16x16xf32>
    %22 = arith.divf %18, %21 : vector<16x16xf32>
    %23 = vector.broadcast %12 : vector<1x16xf32> to vector<8x16xf32>
    %24 = arith.mulf %10, %23 : vector<8x16xf32>
    %cst_16 = arith.constant dense<0.000000e+00> : vector<8x16xf32>
    %25 = tpu.matmul %24, %22, %cst_16 {dimension_numbers = #tpu.dot_dimension_numbers<[1], [1], [0], [0], [0, 0, 1, 0], [], []>} : vector<8x16xf32>, vector<16x16xf32>, vector<8x16xf32> -> vector<8x16xf32>
    %c0_17 = arith.constant 0 : index
    %c0_18 = arith.constant 0 : index
    %26 = vector.load %arg9[%c0_17, %c0_18] : memref<32x16xf32, #tpu.memory_space<vmem>>, vector<32x16xf32>
    %c0_19 = arith.constant 0 : index
    %c0_20 = arith.constant 0 : index
    %c0_21 = arith.constant 0 : index
    %27 = vector.load %arg6[%c0_19, %c0_20, %c0_21] : memref<1x32x8xf32, #tpu.memory_space<vmem>>, vector<1x32x8xf32>
    %28 = vector.shape_cast %27 : vector<1x32x8xf32> to vector<32x8xf32>
    %cst_22 = arith.constant dense<0.000000e+00> : vector<32x16xf32>
    %29 = tpu.matmul %28, %25, %cst_22 {dimension_numbers = #tpu.dot_dimension_numbers<[1], [0], [0], [1], [0, 0, 1, 1], [], []>} : vector<32x8xf32>, vector<8x16xf32>, vector<32x16xf32> -> vector<32x16xf32>
    %30 = arith.addf %26, %29 : vector<32x16xf32>
    %c0_23 = arith.constant 0 : index
    %c0_24 = arith.constant 0 : index
    %31 = vector.load %arg9[%c0_23, %c0_24] : memref<32x16xf32, #tpu.memory_space<vmem>>, vector<32x16xf32>
    tpu.vector_store %arg9[%c0_23, %c0_24], %30 {strides = array<i32>} : memref<32x16xf32, #tpu.memory_space<vmem>>, vector<32x16xf32>,
    %c3_i32 = arith.constant 3 : i32
    %32 = arith.cmpi eq, %arg1, %c3_i32 : i32
    %33 = arith.extui %32 : i1 to i32
    %c0_i32_25 = arith.constant 0 : i32
    %34 = arith.cmpi ne, %33, %c0_i32_25 : i32
    scf.if %34 {
      %c0_26 = arith.constant 0 : index
      %c0_27 = arith.constant 0 : index
      %35 = vector.load %arg9[%c0_26, %c0_27] : memref<32x16xf32, #tpu.memory_space<vmem>>, vector<32x16xf32>
      %c0_28 = arith.constant 0 : index
      %c0_29 = arith.constant 0 : index
      %36 = vector.load %arg7[%c0_28, %c0_29] : memref<32x1xf32, #tpu.memory_space<vmem>>, vector<32x1xf32>
      %37 = vector.broadcast %36 : vector<32x1xf32> to vector<32x16xf32>
      %38 = arith.addf %35, %37 : vector<32x16xf32>
      %39 = vector.broadcast %12 : vector<1x16xf32> to vector<32x16xf32>
      %40 = arith.mulf %38, %39 : vector<32x16xf32>
      %c0_30 = arith.constant 0 : index
      %c0_31 = arith.constant 0 : index
      %c0_32 = arith.constant 0 : index
      %41 = vector.load %arg8[%c0_30, %c0_31, %c0_32] : memref<1x32x16xf32, #tpu.memory_space<vmem>>, vector<1x32x16xf32>
      %42 = vector.shape_cast %41 : vector<1x32x16xf32> to vector<32x16xf32>
      %43 = vector.shape_cast %40 : vector<32x16xf32> to vector<1x32x16xf32>
      tpu.vector_store %arg8[%c0_30, %c0_31, %c0_32], %43 {strides = array<i32>} : memref<1x32x16xf32, #tpu.memory_space<vmem>>, vector<1x32x16xf32>,
    } else {
    }
    return
  }
  func.func @transform_0(%arg0: i32, %arg1: i32) -> (i32, i32, i32, i32) {
    %c0_i32 = arith.constant 0 : i32
    %c0_i32_0 = arith.constant 0 : i32
    %c0_i32_1 = arith.constant 0 : i32
    return %arg0, %arg1, %c0_i32, %c0_i32_0 : i32, i32, i32, i32
  }
  func.func @transform_1(%arg0: i32, %arg1: i32) -> (i32, i32, i32) {
    %c0_i32 = arith.constant 0 : i32
    %c0_i32_0 = arith.constant 0 : i32
    return %arg0, %arg1, %c0_i32 : i32, i32, i32
  }
  func.func @transform_2(%arg0: i32, %arg1: i32) -> (i32, i32, i32) {
    %c0_i32 = arith.constant 0 : i32
    %c0_i32_0 = arith.constant 0 : i32
    return %arg0, %arg1, %c0_i32 : i32, i32, i32
  }
  func.func @transform_3(%arg0: i32, %arg1: i32) -> (i32, i32, i32) {
    %c0_i32 = arith.constant 0 : i32
    %c0_i32_0 = arith.constant 0 : i32
    %c0_i32_1 = arith.constant 0 : i32
    return %arg0, %c0_i32, %c0_i32_0 : i32, i32, i32
  }
  func.func @transform_4(%arg0: i32, %arg1: i32) -> (i32, i32, i32) {
    %c0_i32 = arith.constant 0 : i32
    %c0_i32_0 = arith.constant 0 : i32
    %c0_i32_1 = arith.constant 0 : i32
    return %arg1, %c0_i32, %c0_i32_0 : i32, i32, i32
  }
  func.func @transform_5(%arg0: i32, %arg1: i32) -> (i32, i32) {
    %c0_i32 = arith.constant 0 : i32
    %c0_i32_0 = arith.constant 0 : i32
    %c0_i32_1 = arith.constant 0 : i32
    return %c0_i32, %c0_i32_0 : i32, i32
  }
  func.func @transform_6(%arg0: i32, %arg1: i32) -> (i32, i32, i32) {
    %c0_i32 = arith.constant 0 : i32
    %c0_i32_0 = arith.constant 0 : i32
    %c0_i32_1 = arith.constant 0 : i32
    return %arg0, %c0_i32, %c0_i32_0 : i32, i32, i32
  }
}

</mosaic_0001>

<bundles_post_ra>
// kernel: masked_mhca_forward.3
= control target key start
LH: loop header
LB: loop body
LE: loop exit
PB: predicated region body
PF: predicated region fallthrough
CT: control target
= control target key end

     0   :  { %s1072_s21 = smov 0   ;;  %s1074_s22 = smov 0   ;;  %s1200_s0 = inlined_call_operand.vmem [shape: f32[2,4,16,8], index: 0, kind: input, shape index: {}]   ;;  %s1201_s1 = inlined_call_operand.vmem [shape: f32[2,32,16], index: 1, kind: input, shape index: {}]   ;;  %s1202_s2 = inlined_call_operand.vmem [shape: f32[2,32,16], index: 2, kind: input, shape index: {}]   ;;  %s1203_s3 = inlined_call_operand.vmem [shape: f32[2,1,16], index: 3, kind: input, shape index: {}]   ;;  %s1204_s4 = inlined_call_operand.vmem [shape: f32[4,32,8], index: 4, kind: input, shape index: {}]   ;;  %s1205_s5 = inlined_call_operand.vmem [shape: f32[32,1], index: 5, kind: input, shape index: {}]   ;;  %s1206_s6 = inlined_call_operand.vmem [shape: f32[2,32,16], index: 6, kind: output, shape index: {}]  }
   0x1   :  { %1207 = sst [smem:[#allocation5_spill]] %s1201_s1  ;;  %s1076_s23 = smov 0  }
   0x2   :  { %s1078_s24 = smov 0   ;;  %s1080_s25 = smov 0  }
   0x3 LB: > { %s25_s26 = sadd.s32 1, %s1022_s23  ;;  %s28_s27 = sadd.s32 1, %s1026_s24  ;;  %s1030_s25 = sphi %s1080_s25, %s16_s25   ;;  %s1026_s24 = sphi %s1078_s24, %s1216_s24   ;;  %s1022_s23 = sphi %s1076_s23, %s1215_s23   ;;  %s1018_s22 = sphi %s1074_s22, %s1214_s22   ;;  %s1014_s21 = sphi %s1072_s21, %s1213_s21  }
   0x4   : > { %p26_p0 = scmp.ge.s32.totalorder %s25_s26, 4  ;;  %p874_p1 = scmp.ge.s32.totalorder %s1030_s25, 1 }
   0x5   : > { %p278_p2 = scmp.lt.s32.totalorder %s1030_s25, 9 }
   0x6   : > { %s1218_s26 = smov (%p26_p0, %s25_s26), 0  ;;  %s1220_s27 = smov (!%p26_p0, %s28_s27), %s1026_s24 }
   0x7   : > { %1208 = sst [smem:[#allocation3_spill]] %s1218_s26  ;;  %p279_p3 = pnand %p874_p1, %p278_p2 }
   0x8   : > { %p30_p4 = scmp.ge.s32.totalorder %s1220_s27, 2  ;;  %p336_p5 = scmp.lt.s32.totalorder (!%p279_p3), %s1018_s22, 1 }
   0x9   : > { %282 = sbr.rel (%p279_p3) target bundleno = 1023 (0x3ff), region = 44  ;;  %p338_p6 = scmp.lt.s32.totalorder (!%p279_p3), %s1014_s21, 3 }
   0xa   : > { %s1222_s27 = smov (%p30_p4, %s1220_s27), 0  ;;  %s1210_s1 = sld [smem:[#allocation5_spill]] (!%p279_p3) }
   0xb   : > { %1209 = sst [smem:[#allocation4_spill]] %s1222_s27  ;;  %p886_p7 = scmp.ne.s32.totalorder (!%p279_p3), %s1014_s21, 0 }
  0x10   : > { %s1224_s22 = smov (!%p336_p5, %s1018_s22), 1  ;;  %vm378_vm0 = vcmask (!%p886_p7), 130048   ;;  %v1032_v0 = vmov (!%p886_p7), 0.0  }
  0x11   : > { %s339_s28 = scalar_select %p338_p6, %s1014_s21, 3 }
  0x12   : > { %s876_s29 = sshll.u32 %s1224_s22, 3  ;;  %s878_s30 = sshll.u32 %s1224_s22, 2  ;;  %379 = vst.msk [vmem:[#allocation2] sm:$0xff] (!%p886_p7), %vm378_vm0, %v1032_v0  ;;  %380 = vst.msk [vmem:[#allocation2 + $0x8] sm:$0xff] (!%p886_p7), %vm378_vm0, %v1032_v0 }
  0x13   : > { %s875_s7 = sshll.u32 %s339_s28, 1  ;;  %s350_s8 = sadd.s32 %s878_s30, %s339_s28  ;;  %381 = vst.msk [vmem:[#allocation2 + $0x10] sm:$0xff] (!%p886_p7), %vm378_vm0, %v1032_v0  ;;  %382 = vst.msk [vmem:[#allocation2 + $0x18] sm:$0xff] (!%p886_p7), %vm378_vm0, %v1032_v0 }
  0x14   : > { %s342_s9 = sadd.s32 %s876_s29, %s875_s7  ;;  %s879_s10 = sshll.u32 %s350_s8, 3 }
  0x15   : > { %s877_s11 = sshll.u32 %s342_s9, 3  ;;  %s352_s14 = scalar_lea.vmem %s1210_s1, %s879_s10 }
  0x16   : > { %s344_s17 = scalar_lea.vmem %s1200_s0, %s877_s11  ;;  %s1119_s20 = scalar_lea.vmem %s1202_s2, %s879_s10 }
  0x17   : > { %s363_s30 = scalar_lea.vmem %s1203_s3, %s1224_s22  ;;  %s900_s29 = sshll.u32 %s339_s28, 5 }
  0x18   : > { %s1128_s9 = scalar_lea.vmem %s1204_s4, %s900_s29  ;;  %s901_s12 = sshll.u32 %s1224_s22, 5 }
  0x19   : > { %s1134_s11 = scalar_lea.vmem %s1206_s6, %s901_s12  ;;  %377 = sbr.rel (%p886_p7) target bundleno = 32 (0x20), region = 48 }
  0x20 PF: > { %v387_v1 = vld [vmem:[%s352_s14] sm:$0xff]  ;;  %vm390_vm1 = vcmask 64512   ;;  %v384_v3 = vld [vmem:[%s344_s17 + $0x8] sm:$0xff]  ;;  %vm472_vm2 = vcmask 130048   ;;  %v1033_v20 = vmov 0.0|0.0   ;;  %vm1034_vm3 = vmmov 0  }
  0x21   : > { %v383_v2 = vld [vmem:[%s344_s17] sm:$0xff]  ;;  %913 = vmatprep.subr.mxu0 %v387_v1  ;;  %v386_v5 = vmul.f32 0.35355338, %v384_v3  ;;  %933 = vmatprep.subr.bf16.mxu1 %v1033_v20  ;;  %v1035_v21 = vmov 0.0   ;;  %vm935_vm4 = vmpackc.low %vm472_vm2, %vm472_vm2  ;;  %v586_v34 = vld [vmem:[%s1128_s9 + $0x8] sm:$0xff]  ;;  %p897_p8 = scmp.ne.s32.totalorder %s1014_s21, 3 }
  0x22   : > { %v385_v4 = vmul.f32 0.35355338, %v383_v2  ;;  %914 = vmatpush3.msra.mxu0 %v387_v1  ;;  %922 = vmatprep.mubr.msk.f32.mxu1 %vm1034_vm3, %v1035_v21  ;;  %v388_v29 = vld [vmem:[%s1119_s20] sm:$0xff]  ;;  %v587_v36 = vld [vmem:[%s1128_s9 + $0x10] sm:$0xff]  ;;  %v588_v37 = vld [vmem:[%s1128_s9 + $0x18] sm:$0xff]  ;;  %v1036_v52 = vmov (!%p897_p8), 0  }
  0x23   : > { %v889_v30 = vld [vmem:[%s363_s30] ss:$0 sm:$0xff]  ;;  %v582_v38 = vld [vmem:[#allocation2 + $0x8] sm:$0xff]  ;;  %v584_v44 = vld [vmem:[#allocation2 + $0x18] sm:$0xff]  ;;  %991 = vset.pattern.permute.xlu1 (!%p897_p8), %v1036_v52  ;;  %990 = vset.pattern.permute.xlu0 (!%p897_p8), %v1036_v52 }
  0x24   : > { %915 = vmatprep.mubr.msk.f32.mxu0 %vm390_vm1, %v385_v4  ;;  %v501_v31 = vmul.f32 %v889_v30, %v388_v29  ;;  %v585_v32 = vld [vmem:[%s1128_s9] sm:$0xff]  ;;  %v583_v45 = vld [vmem:[#allocation2 + $0x10] sm:$0xff]  ;;  %v705_v53 = vld [vmem:[%s1205_s5 + $0x18] sm:$0xff] (!%p897_p8) }
  0x25   : > { %916 = vmatmul.mubr.msk.f32.vlgmr.msra.gmra.mrb[0].mxu0 %vm390_vm1, %v386_v5  ;;  %v581_v39 = vld [vmem:[#allocation2] sm:$0xff]  ;;  %v704_v50 = vld [vmem:[%s1205_s5 + $0x10] sm:$0xff] (!%p897_p8)  ;;  %v703_v54 = vld [vmem:[%s1205_s5 + $0x8] sm:$0xff] (!%p897_p8) }
  0x26   : > { %927 = vmatprep.mubr.msk.f32.mxu0 %vm390_vm1, %v585_v32  ;;  %v702_v51 = vld [vmem:[%s1205_s5] sm:$0xff] (!%p897_p8) }
  0xf8   : > { %v917_v6 = vpop.f32.mrb[0].mxu0 }
  0xf9   : > { %v463_v7 = vpop.f32.mrb[1].mxu0  ;;  %v476_v9 = vsel %vm472_vm2, %v917_v6, -inf }
  0xfa   : > { %v473_v8 = vsel %vm472_vm2, %v463_v7, -inf }
  0xfb   : > { %474 = vmax.xlane.f32.xlu0 %v473_v8 }
  0xff   : > { %477 = vmax.xlane.f32.xlu0 %v476_v9 }
 0x115   : > { %708 = vperm.xlu0 (!%p897_p8), %990, %v702_v51  }
 0x119   : > { %713 = vperm.xlu0 (!%p897_p8), %990, %v703_v54  }
 0x188   : > { %v475_v10 = vpop.xlane.xlu0 %474 }
 0x189   : > { %v479_v11 = vsub.f32 %v463_v7, %v475_v10 }
 0x18b   : > { %v481_v12 = vmul.f32 1.442695, %v479_v11 }
 0x18c   : > { %v478_v13 = vpop.xlane.xlu0 %477 }
 0x18d   : > { %982 = vpow2.f32 %v481_v12  ;;  %v480_v14 = vsub.f32 %v917_v6, %v478_v13 }
 0x18f   : > { %v483_v15 = vmul.f32 1.442695, %v480_v14 }
 0x191   : > { %984 = vpow2.f32 %v483_v15 }
 0x194   : > { %v709_v58 = vpop.permute.xlu0 (!%p897_p8), %708 }
 0x197   : > { %v983_v16 = vpop.eup %982 }
 0x198   : > { %v485_v17 = vsel %vm472_vm2, %v983_v16, 0.0  ;;  %v714_v2 = vpop.permute.xlu0 (!%p897_p8), %713 }
 0x199   : > { %486 = vadd.xlane.f32.xlu1 %v485_v17 }
 0x19b   : > { %v985_v18 = vpop.eup %984 }
 0x19c   : > { %v488_v19 = vsel %vm472_vm2, %v985_v18, 0.0 }
 0x19d   : > { %489 = vadd.xlane.f32.xlu1 %v488_v19 }
 0x1ae   : > { %718 = vperm.xlu1 (!%p897_p8), %991, %v704_v50  }
 0x1b2   : > { %723 = vperm.xlu1 (!%p897_p8), %991, %v705_v53  }
 0x226   : > { %v487_v22 = vpop.xlane.xlu1 %486 }
 0x227   : > { %986 = vrcp.f32 %v487_v22 }
 0x22a   : > { %v490_v23 = vpop.xlane.xlu1 %489 }
 0x22b   : > { %988 = vrcp.f32 %v490_v23 }
 0x22e   : > { %v719_v57 = vpop.permute.xlu1 (!%p897_p8), %718 }
 0x231   : > { %v987_v24 = vpop.eup %986 }
 0x232   : > { %v492_v26 = vmul.f32 %v987_v24, %v983_v16  ;;  %v724_v1 = vpop.permute.xlu1 (!%p897_p8), %723 }
 0x235   : > { %v989_v25 = vpop.eup %988 }
 0x236   : > { %v494_v27 = vmul.f32 %v989_v25, %v985_v18 }
 0x238   : > { %v934_v28 = vpack.c.bf16 %v494_v27, %v492_v26 }
 0x23a   : > { %936 = vmatpush3.bf16.xpose.msk.msra.mxu1 %vm935_vm4, %v934_v28 }
 0x241   : > { %923 = vmatmul.mubr.msk.f32.vlgmr.msra.gmra.mrb[0].mxu1 %vm472_vm2, %v501_v31 }
 0x314   : > { %v577_v33 = vpop.f32.mrb[0].mxu1 }
 0x315   : > { %v924_v35 = vpop.f32.mrb[1].mxu1  ;;  %925 = vmatprep.subr.mxu0 %v577_v33 }
 0x316   : > { %926 = vmatpush3.msra.mxu0 %v577_v33 }
 0x317   : > { %928 = vmatmul.mubr.msk.f32.vlgmr.msra.gmra.mrb[2].mxu0 %vm390_vm1, %v586_v34 }
 0x318   : > { %930 = vmatprep.mubr.msk.f32.mxu0 %vm390_vm1, %v587_v36 }
 0x31b   : > { %931 = vmatmul.mubr.msk.f32.gmra.mrb[4].mxu0 %vm390_vm1, %v588_v37 }
 0x3ea   : > { %v929_v40 = vpop.f32.mrb[2].mxu0 }
 0x3eb   : > { %v687_v41 = vadd.f32 %v929_v40, %v582_v38  ;;  %v667_v42 = vpop.f32.mrb[3].mxu0 }
 0x3ec   : > { %v686_v43 = vadd.f32 %v667_v42, %v581_v39  ;;  %697 = sbr.rel (%p897_p8) target bundleno = 1023 (0x3ff), region = 52 }
 0x3ed   : > { %691 = vst.msk [vmem:[#allocation2 + $0x8] sm:$0xff] %vm472_vm2, %v687_v41 }
 0x3ee   : > { %690 = vst.msk [vmem:[#allocation2] sm:$0xff] %vm472_vm2, %v686_v43  ;;  %v932_v46 = vpop.f32.mrb[4].mxu0 }
 0x3ef   : > { %v689_v47 = vadd.f32 %v932_v46, %v584_v44  ;;  %v677_v48 = vpop.f32.mrb[5].mxu0 }
 0x3f0   : > { %v688_v49 = vadd.f32 %v677_v48, %v583_v45 }
 0x3f1   : > { %693 = vst.msk [vmem:[#allocation2 + $0x18] sm:$0xff] %vm472_vm2, %v689_v47 }
 0x3f2   : > { %692 = vst.msk [vmem:[#allocation2 + $0x10] sm:$0xff] %vm472_vm2, %v688_v49 }
 0x3f4   : > { %v699_v62 = vld [vmem:[#allocation2 + $0x8] sm:$0xff] }
 0x3f5   : > { %v698_v56 = vld [vmem:[#allocation2] sm:$0xff]  ;;  %v727_v4 = vadd.f32 %v714_v2, %v699_v62 }
 0x3f6   : > { %v726_v60 = vadd.f32 %v709_v58, %v698_v56 }
 0x3f7   : > { %v731_v6 = vmul.f32 %v889_v30, %v727_v4 }
 0x3f8   : > { %v701_v61 = vld [vmem:[#allocation2 + $0x18] sm:$0xff]  ;;  %v730_v0 = vmul.f32 %v889_v30, %v726_v60 }
 0x3f9   : > { %v700_v55 = vld [vmem:[#allocation2 + $0x10] sm:$0xff]  ;;  %v729_v3 = vadd.f32 %v724_v1, %v701_v61  ;;  %735 = vst.msk [vmem:[%s1134_s11 + $0x8] sm:$0xff] %vm472_vm2, %v731_v6 }
 0x3fa   : > { %v728_v59 = vadd.f32 %v719_v57, %v700_v55  ;;  %734 = vst.msk [vmem:[%s1134_s11] sm:$0xff] %vm472_vm2, %v730_v0 }
 0x3fb   : > { %v733_v5 = vmul.f32 %v889_v30, %v729_v3 }
 0x3fc   : > { %v732_v63 = vmul.f32 %v889_v30, %v728_v59 }
 0x3fd   : > { %737 = vst.msk [vmem:[%s1134_s11 + $0x18] sm:$0xff] %vm472_vm2, %v733_v5 }
 0x3fe   : > { %736 = vst.msk [vmem:[%s1134_s11 + $0x10] sm:$0xff] %vm472_vm2, %v732_v63 }
 0x3ff PF: > { %s16_s25 = sadd.s32 1, %s1030_s25   ;;  %s1211_s17 = sld [smem:[#allocation3_spill]] }
 0x400   : > { %p13_p9 = scmp.ge.s32.totalorder %s16_s25, 10   ;;  %s1212_s18 = sld [smem:[#allocation4_spill]] }
 0x401   : > { %s1213_s21 = smov %s1022_s23  ;;  %s1214_s22 = smov %s1026_s24 }
 0x402   :  { %15 = sbr.rel (!%p13_p9) target bundleno = 3 (0x3), region = 94 }
 0x405   : > { %s1215_s23 = smov %s1211_s17 }
 0x406   : > { %s1216_s24 = smov %s1212_s18 }

// kernel: masked_mhca_forward.2
= control target key start
LH: loop header
LB: loop body
LE: loop exit
PB: predicated region body
PF: predicated region fallthrough
CT: control target
= control target key end

     0   :  { %s1639_s30 = smov 0   ;;  %s1641_s10 = smov 0   ;;  %s1907_s0 = inlined_call_operand.vmem [shape: f32[2,32,32], index: 0, kind: input, shape index: {}]   ;;  %s1908_s1 = inlined_call_operand.vmem [shape: f32[2,1,16], index: 1, kind: input, shape index: {}]   ;;  %s1909_s2 = inlined_call_operand.vmem [shape: f32[32,16], index: 2, kind: input, shape index: {}]   ;;  %s1910_s3 = inlined_call_operand.vmem [shape: f32[3,32,1], index: 3, kind: input, shape index: {}]   ;;  %s1911_s4 = inlined_call_operand.vmem [shape: f32[3,32,1], index: 4, kind: input, shape index: {}]   ;;  %s1912_s5 = inlined_call_operand.vmem [shape: f32[3,32,32], index: 5, kind: input, shape index: {}]   ;;  %s1913_s6 = inlined_call_operand.vmem [shape: f32[3,32,1], index: 6, kind: input, shape index: {}]   ;;  %s1914_s7 = inlined_call_operand.vmem [shape: f32[2,32,16], index: 7, kind: output, shape index: {0}]   ;;  %s1915_s8 = inlined_call_operand.vmem [shape: f32[2,32,16], index: 8, kind: output, shape index: {1}]   ;;  %s1916_s9 = inlined_call_operand.vmem [shape: f32[2,32,16], index: 9, kind: output, shape index: {2}]  }
   0x1   :  { %s1643_s11 = smov 0  }
   0x2 LB: > { %s32_s12 = sadd.s32 1, %s1582_s10  ;;  %p1351_p0 = scmp.ge.s32.totalorder %s1586_s11, 1  ;;  %s1586_s11 = sphi %s1643_s11, %s20_s11   ;;  %s1582_s10 = sphi %s1641_s10, %s1918_s10   ;;  %s1578_s30 = sphi %s1639_s30, %s1917_s30  }
   0x3   : > { %p34_p1 = scmp.ge.s32.totalorder %s32_s12, 2  ;;  %p328_p2 = scmp.lt.s32.totalorder %s1586_s11, 3 }
   0x5   : > { %s1920_s12 = smov (%p34_p1, %s32_s12), 0  ;;  %p329_p3 = pnand %p1351_p0, %p328_p2 }
   0x6   : > { %v439_v0 = vld [vmem:[%s1909_s2] sm:$0xff] (!%p329_p3)  ;;  %v440_v1 = vld [vmem:[%s1909_s2 + $0x8] sm:$0xff] (!%p329_p3)  ;;  %v441_v2 = vld [vmem:[%s1909_s2 + $0x10] sm:$0xff] (!%p329_p3)  ;;  %p392_p4 = scmp.lt.s32.totalorder (!%p329_p3), %s1578_s30, 1  ;;  %v1588_v5 = vmov (!%p329_p3), 0   ;;  %vm443_vm0 = vcmask (!%p329_p3), 261120  }
   0x7   : > { %332 = sbr.rel (%p329_p3) target bundleno = 542 (0x21e), region = 48  ;;  %v1503_v3 = vpack.c.bf16 (!%p329_p3), %v440_v1, %v439_v0  ;;  %v442_v4 = vld [vmem:[%s1909_s2 + $0x18] sm:$0xff] (!%p329_p3)  ;;  %1561 = vset.pattern.permute.xlu1 (!%p329_p3), %v1588_v5  ;;  %1560 = vset.pattern.permute.xlu0 (!%p329_p3), %v1588_v5  ;;  %v623_v6 = vld [vmem:[%s1911_s4] sm:$0xff] (!%p329_p3)  ;;  %v624_v9 = vld [vmem:[%s1911_s4 + $0x8] sm:$0xff] (!%p329_p3)  ;;  %vm551_vm1 = vcmask (!%p329_p3), 130048  }
   0x8   : > { %v595_v7 = vld [vmem:[%s1910_s3] sm:$0xff] (!%p329_p3)  ;;  %v1507_v8 = vpack.c.bf16 (!%p329_p3), %v442_v4, %v441_v2  ;;  %629 = vperm.xlu1 (!%p329_p3), %1561, %v623_v6   ;;  %v596_v10 = vld [vmem:[%s1910_s3 + $0x8] sm:$0xff] (!%p329_p3)  ;;  %v598_v16 = vld [vmem:[%s1910_s3 + $0x18] sm:$0xff] (!%p329_p3) }
   0x9   : > { %601 = vperm.xlu0 (!%p329_p3), %1560, %v595_v7   ;;  %1504 = vmatprep.subr.bf16.mxu0 (!%p329_p3), %v1503_v3  ;;  %v597_v17 = vld [vmem:[%s1910_s3 + $0x10] sm:$0xff] (!%p329_p3)  ;;  %v626_v21 = vld [vmem:[%s1911_s4 + $0x18] sm:$0xff] (!%p329_p3)  ;;  %v1370_v23 = vld [vmem:[%s1910_s3 + $0x28] sm:$0xff] (!%p329_p3) }
   0xa   : > { %1506 = vmatpush3.bf16.msra.mxu0 (!%p329_p3), %v1503_v3  ;;  %v625_v22 = vld [vmem:[%s1911_s4 + $0x10] sm:$0xff] (!%p329_p3)  ;;  %v1369_v24 = vld [vmem:[%s1910_s3 + $0x20] sm:$0xff] (!%p329_p3)  ;;  %v1390_v25 = vld [vmem:[%s1910_s3 + $0x48] sm:$0xff] (!%p329_p3) }
   0xb   : > { %1508 = vmatprep.subr.bf16.mxu0 (!%p329_p3), %v1507_v8  ;;  %v1389_v26 = vld [vmem:[%s1910_s3 + $0x40] sm:$0xff] (!%p329_p3)  ;;  %v1374_v27 = vld [vmem:[%s1911_s4 + $0x28] sm:$0xff] (!%p329_p3)  ;;  %v1372_v31 = vld [vmem:[%s1910_s3 + $0x38] sm:$0xff] (!%p329_p3) }
   0xc   : > { %634 = vperm.xlu1 (!%p329_p3), %1561, %v624_v9   ;;  %v1373_v28 = vld [vmem:[%s1911_s4 + $0x20] sm:$0xff] (!%p329_p3)  ;;  %v1394_v29 = vld [vmem:[%s1911_s4 + $0x48] sm:$0xff] (!%p329_p3)  ;;  %v1371_v32 = vld [vmem:[%s1910_s3 + $0x30] sm:$0xff] (!%p329_p3) }
   0xd   : > { %606 = vperm.xlu0 (!%p329_p3), %1560, %v596_v10   ;;  %v1393_v30 = vld [vmem:[%s1911_s4 + $0x40] sm:$0xff] (!%p329_p3)  ;;  %v1392_v33 = vld [vmem:[%s1910_s3 + $0x58] sm:$0xff] (!%p329_p3)  ;;  %v1391_v34 = vld [vmem:[%s1910_s3 + $0x50] sm:$0xff] (!%p329_p3) }
   0xe   : > { %s1922_s30 = smov (!%p392_p4, %s1578_s30), 1  ;;  %1510 = vmatpush3.bf16.msra.mxu0 %v1507_v8  ;;  %v1376_v35 = vld [vmem:[%s1911_s4 + $0x38] sm:$0xff]  ;;  %v1375_v36 = vld [vmem:[%s1911_s4 + $0x30] sm:$0xff]  ;;  %v656_v39 = vld [vmem:[%s1913_s6 + $0x8] sm:$0xff] }
   0xf   : > { %s1684_s29 = sshll.u32 %s1922_s30, 5  ;;  %v1396_v37 = vld [vmem:[%s1911_s4 + $0x58] sm:$0xff]  ;;  %v1395_v38 = vld [vmem:[%s1911_s4 + $0x50] sm:$0xff]  ;;  %v655_v40 = vld [vmem:[%s1913_s6] sm:$0xff]  ;;  %s405_s22 = scalar_lea.vmem %s1908_s1, %s1922_s30 }
  0x10   : > { %s399_s15 = scalar_lea.vmem %s1907_s0, %s1684_s29  ;;  %616 = vperm.xlu1 %1561, %v598_v16   ;;  %v658_v41 = vld [vmem:[%s1913_s6 + $0x18] sm:$0xff]  ;;  %v657_v42 = vld [vmem:[%s1913_s6 + $0x10] sm:$0xff]  ;;  %v1382_v43 = vld [vmem:[%s1913_s6 + $0x28] sm:$0xff]  ;;  %s413_s27 = scalar_lea.vmem %s1914_s7, %s1684_s29 }
  0x11   : > { %v430_v11 = vld [vmem:[%s399_s15] sm:$0xff]  ;;  %v431_v12 = vld [vmem:[%s399_s15 + $0x8] sm:$0xff]  ;;  %v432_v13 = vld [vmem:[%s399_s15 + $0x10] sm:$0xff]  ;;  %611 = vperm.xlu0 %1560, %v597_v17   ;;  %s421_s14 = scalar_lea.vmem %s1915_s8, %s1684_s29  ;;  %s429_s17 = scalar_lea.vmem %s1916_s9, %s1684_s29 }
  0x12   : > { %v435_v14 = vmul.f32 %v430_v11, %v430_v11  ;;  %v436_v15 = vmul.f32 %v431_v12, %v431_v12  ;;  %v437_v18 = vmul.f32 %v432_v13, %v432_v13  ;;  %v433_v19 = vld [vmem:[%s399_s15 + $0x18] sm:$0xff]  ;;  %v1381_v44 = vld [vmem:[%s1913_s6 + $0x20] sm:$0xff]  ;;  %v1383_v46 = vld [vmem:[%s1913_s6 + $0x30] sm:$0xff] }
  0x13   : > { %v438_v20 = vmul.f32 %v433_v19, %v433_v19  ;;  %v1384_v45 = vld [vmem:[%s1913_s6 + $0x38] sm:$0xff]  ;;  %v1402_v47 = vld [vmem:[%s1913_s6 + $0x48] sm:$0xff]  ;;  %v1401_v48 = vld [vmem:[%s1913_s6 + $0x40] sm:$0xff] }
  0x14   : > { %1455 = vmatprep.mubr.msk.f32.mxu0 %vm443_vm0, %v435_v14  ;;  %644 = vperm.xlu1 %1561, %v626_v21   ;;  %v1404_v49 = vld [vmem:[%s1913_s6 + $0x58] sm:$0xff]  ;;  %v1403_v50 = vld [vmem:[%s1913_s6 + $0x50] sm:$0xff]  ;;  %v651_v51 = vld [vmem:[%s1912_s5] sm:$0xff] }
  0x15   : > { %1456 = vmatmul.mubr.msk.f32.vlgmr.msra.gmra.mrb[0].mxu0 %vm443_vm0, %v436_v15  ;;  %639 = vperm.xlu0 %1560, %v625_v22   ;;  %v1377_v52 = vld [vmem:[%s1912_s5 + $0x20] sm:$0xff] }
  0x16   : > { %1458 = vmatprep.mubr.msk.f32.mxu0 %vm443_vm0, %v437_v18  ;;  %1469 = vmatprep.mubr.msk.f32.mxu1 %vm443_vm0, %v651_v51  ;;  %v1364_v53 = vld [vmem:[%s405_s22] ss:$0 sm:$0xff] }
  0x18   : > { %792 = vperm.xlu1 %1561, %v1370_v23  }
  0x19   : > { %1459 = vmatmul.mubr.msk.f32.gmra.mrb[2].mxu0 %vm443_vm0, %v438_v20  ;;  %787 = vperm.xlu0 %1560, %v1369_v24  }
  0x1a   : > { %1483 = vmatprep.mubr.msk.f32.mxu0 %vm443_vm0, %v1377_v52 }
  0x1c   : > { %981 = vperm.xlu1 %1561, %v1390_v25  }
  0x1d   : > { %976 = vperm.xlu0 %1560, %v1389_v26  }
  0x20   : > { %821 = vperm.xlu1 %1561, %v1374_v27  }
  0x21   : > { %816 = vperm.xlu0 %1560, %v1373_v28  }
  0x24   : > { %1010 = vperm.xlu1 %1561, %v1394_v29  }
  0x25   : > { %1005 = vperm.xlu0 %1560, %v1393_v30  }
  0x28   : > { %802 = vperm.xlu1 %1561, %v1372_v31  }
  0x29   : > { %797 = vperm.xlu0 %1560, %v1371_v32  }
  0x2c   : > { %991 = vperm.xlu1 %1561, %v1392_v33  }
  0x2d   : > { %986 = vperm.xlu0 %1560, %v1391_v34  }
  0x30   : > { %831 = vperm.xlu1 %1561, %v1376_v35  }
  0x31   : > { %826 = vperm.xlu0 %1560, %v1375_v36  }
  0x34   : > { %1020 = vperm.xlu1 %1561, %v1396_v37  }
  0x35   : > { %1015 = vperm.xlu0 %1560, %v1395_v38  }
  0x38   : > { %666 = vperm.xlu1 %1561, %v656_v39  }
  0x39   : > { %661 = vperm.xlu0 %1560, %v655_v40  }
  0x3c   : > { %676 = vperm.xlu1 %1561, %v658_v41  }
  0x3d   : > { %671 = vperm.xlu0 %1560, %v657_v42  }
  0x40   : > { %855 = vperm.xlu1 %1561, %v1382_v43  }
  0x41   : > { %850 = vperm.xlu0 %1560, %v1381_v44  }
  0x44   : > { %865 = vperm.xlu1 %1561, %v1384_v45  }
  0x45   : > { %860 = vperm.xlu0 %1560, %v1383_v46  }
  0x48   : > { %1044 = vperm.xlu1 %1561, %v1402_v47  }
  0x49   : > { %1039 = vperm.xlu0 %1560, %v1401_v48  }
  0x4c   : > { %1054 = vperm.xlu1 %1561, %v1404_v49  }
  0x4d   : > { %1049 = vperm.xlu0 %1560, %v1403_v50  }
  0x87   : > { %v1802_v57 = vpop.permute.xlu1 %629 }
  0x88   : > { %v1804_v58 = vpop.permute.xlu0 %601 }
  0x8b   : > { %v1808_v3 = vpop.permute.xlu1 %634 }
  0x8c   : > { %v1810_v4 = vpop.permute.xlu0 %606 }
  0x8f   : > { %v1814_v10 = vpop.permute.xlu1 %616 }
  0x90   : > { %v1816_v11 = vpop.permute.xlu0 %611 }
  0x93   : > { %v1818_v15 = vpop.permute.xlu1 %644 }
  0x94   : > { %v1820_v16 = vpop.permute.xlu0 %639 }
  0x97   : > { %v793_v20 = vpop.permute.xlu1 %792 }
  0x98   : > { %v788_v21 = vpop.permute.xlu0 %787 }
  0x9b   : > { %v982_v32 = vpop.permute.xlu1 %981 }
  0x9c   : > { %v977_v33 = vpop.permute.xlu0 %976 }
  0x9f   : > { %v822_v39 = vpop.permute.xlu1 %821 }
  0xa0   : > { %v817_v40 = vpop.permute.xlu0 %816 }
  0xa3   : > { %v1011_v44 = vpop.permute.xlu1 %1010 }
  0xa4   : > { %v1006_v45 = vpop.permute.xlu0 %1005 }
  0xa7   : > { %v803_v49 = vpop.permute.xlu1 %802 }
  0xa8   : > { %v798_v50 = vpop.permute.xlu0 %797 }
  0xe8   : > { %v1457_v54 = vpop.f32.mrb[0].mxu0 }
  0xe9   : > { %v548_v55 = vmul.f32 %v1457_v54, %v1364_v53  ;;  %v522_v56 = vpop.f32.mrb[1].mxu0  ;;  %v987_v54 = vpop.permute.xlu0 %986 }
  0xea   : > { %v547_v59 = vmul.f32 %v1364_v53, %v522_v56 }
  0xeb   : > { %v553_v60 = vsel %vm551_vm1, %v548_v55, 0.0 }
  0xec   : > { %v552_v61 = vsel %vm551_vm1, %v547_v59, 0.0  ;;  %v1460_v62 = vpop.f32.mrb[2].mxu0 }
  0xed   : > { %v554_v63 = vadd.f32 %v553_v60, %v552_v61  ;;  %v550_v0 = vmul.f32 %v1460_v62, %v1364_v53  ;;  %v532_v1 = vpop.f32.mrb[3].mxu0  ;;  %v827_v56 = vpop.permute.xlu0 %826 }
  0xee   : > { %v549_v2 = vmul.f32 %v1364_v53, %v532_v1  ;;  %v992_v53 = vpop.permute.xlu1 %991 }
  0xef   : > { %v557_v7 = vsel %vm551_vm1, %v550_v0, 0.0 }
  0xf0   : > { %v555_v5 = vsel %vm551_vm1, %v549_v2, 0.0 }
  0xf1   : > { %v556_v6 = vadd.f32 %v555_v5, %v554_v63 }
  0xf3   : > { %v558_v8 = vadd.f32 %v557_v7, %v556_v6  ;;  %v1016_v7 = vpop.permute.xlu0 %1015 }
  0xf5   : > { %v559_v9 = vrot.slane %v558_v8, 4 }
  0xf7   : > { %v560_v12 = vadd.f32 %v559_v9, %v558_v8 }
  0xf9   : > { %v561_v13 = vrot.slane %v560_v12, 2 }
  0xfb   : > { %v562_v14 = vadd.f32 %v561_v13, %v560_v12 }
  0xfd   : > { %v563_v17 = vrot.slane %v562_v14, 1 }
  0xff   : > { %v564_v18 = vadd.f32 %v563_v17, %v562_v14 }
 0x101   : > { %v566_v19 = vmul.f32 0.03125, %v564_v18 }
 0x103   : > { %v567_v22 = vsub.f32 %v547_v59, %v566_v19  ;;  %v568_v23 = vsub.f32 %v548_v55, %v566_v19  ;;  %v569_v24 = vsub.f32 %v549_v2, %v566_v19  ;;  %v570_v25 = vsub.f32 %v550_v0, %v566_v19  ;;  %v832_v55 = vpop.permute.xlu1 %831 }
 0x105   : > { %v571_v26 = vmul.f32 %v567_v22, %v567_v22  ;;  %v572_v27 = vmul.f32 %v568_v23, %v568_v23  ;;  %v573_v28 = vmul.f32 %v569_v24, %v569_v24  ;;  %v574_v29 = vmul.f32 %v570_v25, %v570_v25 }
 0x107   : > { %v575_v30 = vsel %vm551_vm1, %v571_v26, 0.0  ;;  %v576_v31 = vsel %vm551_vm1, %v572_v27, 0.0  ;;  %v578_v35 = vsel %vm551_vm1, %v573_v28, 0.0  ;;  %v580_v37 = vsel %vm551_vm1, %v574_v29, 0.0  ;;  %v1021_v6 = vpop.permute.xlu1 %1020 }
 0x108   : > { %v577_v34 = vadd.f32 %v576_v31, %v575_v30 }
 0x10a   : > { %v579_v36 = vadd.f32 %v578_v35, %v577_v34 }
 0x10c   : > { %v581_v38 = vadd.f32 %v580_v37, %v579_v36  ;;  %v1397_v36 = vld [vmem:[%s1912_s5 + $0x40] sm:$0xff]  ;;  %v1398_v37 = vld [vmem:[%s1912_s5 + $0x48] sm:$0xff] }
 0x10e   : > { %v582_v41 = vrot.slane %v581_v38, 4 }
 0x110   : > { %v583_v42 = vadd.f32 %v582_v41, %v581_v38  ;;  %v1399_v38 = vld [vmem:[%s1912_s5 + $0x50] sm:$0xff]  ;;  %v662_v41 = vpop.permute.xlu0 %661 }
 0x112   : > { %v584_v43 = vrot.slane %v583_v42, 2 }
 0x114   : > { %v585_v46 = vadd.f32 %v584_v43, %v583_v42  ;;  %v672_v43 = vpop.permute.xlu0 %671 }
 0x116   : > { %v586_v47 = vrot.slane %v585_v46, 1 }
 0x118   : > { %v587_v48 = vadd.f32 %v586_v47, %v585_v46 }
 0x11a   : > { %v588_v51 = vmul.f32 0.03125, %v587_v48 }
 0x11c   : > { %v589_v52 = vadd.f32 1e-05, %v588_v51 }
 0x11e   : > { %1562 = vrsqrt.f32 %v589_v52 }
 0x128   : > { %v1563_v59 = vpop.eup %1562 }
 0x129   : > { %v593_v60 = vmul.f32 %v1563_v59, %v569_v24  ;;  %v594_v61 = vmul.f32 %v1563_v59, %v570_v25  ;;  %v591_v62 = vmul.f32 %v1563_v59, %v567_v22  ;;  %v592_v63 = vmul.f32 %v1563_v59, %v568_v23 }
 0x12b   : > { %v808_v0 = vmul.f32 %v803_v49, %v594_v61  ;;  %v807_v1 = vmul.f32 %v798_v50, %v593_v60  ;;  %v997_v2 = vmul.f32 %v992_v53, %v594_v61  ;;  %v996_v5 = vmul.f32 %v987_v54, %v593_v60 }
 0x12c   : > { %v619_v8 = vmul.f32 %v1804_v58, %v591_v62  ;;  %v620_v9 = vmul.f32 %v1810_v4, %v592_v63  ;;  %v805_v12 = vmul.f32 %v788_v21, %v591_v62  ;;  %v806_v13 = vmul.f32 %v793_v20, %v592_v63 }
 0x12d   : > { %v837_v14 = vadd.f32 %v832_v55, %v808_v0  ;;  %v836_v17 = vadd.f32 %v827_v56, %v807_v1  ;;  %v1026_v18 = vadd.f32 %v1021_v6, %v997_v2  ;;  %v1025_v19 = vadd.f32 %v1016_v7, %v996_v5 }
 0x12e   : > { %v647_v24 = vadd.f32 %v1802_v57, %v619_v8  ;;  %v648_v22 = vadd.f32 %v1808_v3, %v620_v9  ;;  %v834_v23 = vadd.f32 %v817_v40, %v805_v12  ;;  %v835_v25 = vadd.f32 %v822_v39, %v806_v13  ;;  %v1400_v39 = vld [vmem:[%s1912_s5 + $0x58] sm:$0xff]  ;;  %v667_v40 = vpop.permute.xlu1 %666 }
 0x12f   : > { %v1523_v26 = vpack.c.bf16 %v837_v14, %v836_v17  ;;  %v1531_v27 = vpack.c.bf16 %v1026_v18, %v1025_v19  ;;  %v621_v28 = vmul.f32 %v1816_v11, %v593_v60  ;;  %v622_v58 = vmul.f32 %v1814_v10, %v594_v61  ;;  %v652_v10 = vld [vmem:[%s1912_s5 + $0x8] sm:$0xff] }
 0x130   : > { %v1511_v29 = vpack.c.bf16 %v648_v22, %v647_v24  ;;  %v1519_v4 = vpack.c.bf16 %v835_v25, %v834_v23  ;;  %v994_v21 = vmul.f32 %v977_v33, %v591_v62  ;;  %v995_v20 = vmul.f32 %v982_v32, %v592_v63  ;;  %v1378_v11 = vld [vmem:[%s1912_s5 + $0x28] sm:$0xff]  ;;  %v654_v32 = vld [vmem:[%s1912_s5 + $0x18] sm:$0xff] }
 0x131   : > { %v649_v30 = vadd.f32 %v1820_v16, %v621_v28  ;;  %v650_v31 = vadd.f32 %v1818_v15, %v622_v58  ;;  %v653_v15 = vld [vmem:[%s1912_s5 + $0x10] sm:$0xff]  ;;  %v1380_v33 = vld [vmem:[%s1912_s5 + $0x38] sm:$0xff] }
 0x132   : > { %1512 = vmatprep.subr.bf16.mxu1 %v1511_v29  ;;  %1520 = vmatprep.subr.bf16.mxu0 %v1519_v4  ;;  %v1023_v57 = vadd.f32 %v1006_v45, %v994_v21  ;;  %v1024_v3 = vadd.f32 %v1011_v44, %v995_v20  ;;  %v1379_v16 = vld [vmem:[%s1912_s5 + $0x30] sm:$0xff]  ;;  %v677_v42 = vpop.permute.xlu1 %676  ;;  %v851_v45 = vpop.permute.xlu0 %850 }
 0x133   : > { %1514 = vmatpush3.bf16.msra.mxu1 %v1511_v29  ;;  %1522 = vmatpush3.bf16.msra.mxu0 %v1519_v4  ;;  %v1515_v34 = vpack.c.bf16 %v650_v31, %v649_v30 }
 0x134   : > { %1524 = vmatprep.subr.bf16.mxu0 %v1523_v26  ;;  %v1527_v35 = vpack.c.bf16 %v1024_v3, %v1023_v57 }
 0x135   : > { %1516 = vmatprep.subr.bf16.mxu1 %v1515_v34 }
 0x136   : > { %v856_v44 = vpop.permute.xlu1 %855  ;;  %v861_v47 = vpop.permute.xlu0 %860 }
 0x137   : > { %1518 = vmatpush3.bf16.msra.mxu1 %v1515_v34  ;;  %1526 = vmatpush3.bf16.msra.mxu0 %v1523_v26 }
 0x138   : > { %1528 = vmatprep.subr.bf16.mxu1 %v1527_v35 }
 0x13a   : > { %1470 = vmatmul.mubr.msk.f32.vlgmr.msra.gmra.mrb[0].mxu1 %vm443_vm0, %v652_v10  ;;  %1484 = vmatmul.mubr.msk.f32.vlgmr.msra.gmra.mrb[4].mxu0 %vm443_vm0, %v1378_v11  ;;  %v866_v46 = vpop.permute.xlu1 %865  ;;  %v1040_v5 = vpop.permute.xlu0 %1039 }
 0x13b   : > { %1530 = vmatpush3.bf16.msra.mxu1 %v1527_v35  ;;  %1472 = vmatprep.mubr.msk.f32.mxu1 %vm443_vm0, %v653_v15 }
 0x13c   : > { %1532 = vmatprep.subr.bf16.mxu1 %v1531_v27  ;;  %1486 = vmatprep.mubr.msk.f32.mxu0 %vm443_vm0, %v1379_v16 }
 0x13e   : > { %1473 = vmatmul.mubr.msk.f32.gmra.mrb[2].mxu1 %vm443_vm0, %v654_v32  ;;  %1487 = vmatmul.mubr.msk.f32.gmra.mrb[6].mxu0 %vm443_vm0, %v1380_v33  ;;  %v1045_v0 = vpop.permute.xlu1 %1044  ;;  %v1050_v14 = vpop.permute.xlu0 %1049 }
 0x13f   : > { %1534 = vmatpush3.bf16.msra.mxu1 %v1531_v27  ;;  %1497 = vmatprep.mubr.msk.f32.mxu1 %vm443_vm0, %v1397_v36 }
 0x142   : > { %1498 = vmatmul.mubr.msk.f32.vlgmr.msra.gmra.mrb[4].mxu1 %vm443_vm0, %v1398_v37  ;;  %v1055_v12 = vpop.permute.xlu1 %1054 }
 0x143   : > { %1500 = vmatprep.mubr.msk.f32.mxu1 %vm443_vm0, %v1399_v38 }
 0x146   : > { %1501 = vmatmul.mubr.msk.f32.gmra.mrb[6].mxu1 %vm443_vm0, %v1400_v39 }
 0x20d   : > { %v1471_v48 = vpop.f32.mrb[0].mxu1  ;;  %v1485_v49 = vpop.f32.mrb[4].mxu0 }
 0x20e   : > { %v763_v50 = vadd.f32 %v1471_v48, %v667_v40  ;;  %v952_v51 = vadd.f32 %v1485_v49, %v856_v44  ;;  %v757_v52 = vpop.f32.mrb[1].mxu1  ;;  %v946_v53 = vpop.f32.mrb[5].mxu0 }
 0x20f   : > { %v758_v54 = vadd.f32 %v757_v52, %v662_v41  ;;  %v947_v55 = vadd.f32 %v946_v53, %v851_v45 }
 0x210   : > { %777 = vst.msk [vmem:[%s413_s27 + $0x8] sm:$0xff] %vm551_vm1, %v763_v50  ;;  %966 = vst.msk [vmem:[%s421_s14 + $0x8] sm:$0xff] %vm551_vm1, %v952_v51 }
 0x211   : > { %776 = vst.msk [vmem:[%s413_s27] sm:$0xff] %vm551_vm1, %v758_v54  ;;  %965 = vst.msk [vmem:[%s421_s14] sm:$0xff] %vm551_vm1, %v947_v55  ;;  %v1474_v56 = vpop.f32.mrb[2].mxu1  ;;  %v1488_v59 = vpop.f32.mrb[6].mxu0 }
 0x212   : > { %v773_v60 = vadd.f32 %v1474_v56, %v677_v42  ;;  %v962_v61 = vadd.f32 %v1488_v59, %v866_v46  ;;  %v767_v62 = vpop.f32.mrb[3].mxu1  ;;  %v956_v63 = vpop.f32.mrb[7].mxu0 }
 0x213   : > { %v768_v1 = vadd.f32 %v767_v62, %v672_v43  ;;  %v957_v2 = vadd.f32 %v956_v63, %v861_v47 }
 0x214   : > { %779 = vst.msk [vmem:[%s413_s27 + $0x18] sm:$0xff] %vm551_vm1, %v773_v60  ;;  %968 = vst.msk [vmem:[%s421_s14 + $0x18] sm:$0xff] %vm551_vm1, %v962_v61 }
 0x215   : > { %778 = vst.msk [vmem:[%s413_s27 + $0x10] sm:$0xff] %vm551_vm1, %v768_v1  ;;  %967 = vst.msk [vmem:[%s421_s14 + $0x10] sm:$0xff] %vm551_vm1, %v957_v2  ;;  %v1499_v6 = vpop.f32.mrb[4].mxu1 }
 0x216   : > { %v1141_v7 = vadd.f32 %v1499_v6, %v1045_v0  ;;  %v1135_v8 = vpop.f32.mrb[5].mxu1 }
 0x217   : > { %v1136_v9 = vadd.f32 %v1135_v8, %v1040_v5 }
 0x218   : > { %1155 = vst.msk [vmem:[%s429_s17 + $0x8] sm:$0xff] %vm551_vm1, %v1141_v7 }
 0x219   : > { %1154 = vst.msk [vmem:[%s429_s17] sm:$0xff] %vm551_vm1, %v1136_v9  ;;  %v1502_v13 = vpop.f32.mrb[6].mxu1 }
 0x21a   : > { %v1151_v17 = vadd.f32 %v1502_v13, %v1055_v12  ;;  %v1145_v18 = vpop.f32.mrb[7].mxu1 }
 0x21b   : > { %v1146_v19 = vadd.f32 %v1145_v18, %v1050_v14 }
 0x21c   : > { %1157 = vst.msk [vmem:[%s429_s17 + $0x18] sm:$0xff] %vm551_vm1, %v1151_v17 }
 0x21d   : > { %1156 = vst.msk [vmem:[%s429_s17 + $0x10] sm:$0xff] %vm551_vm1, %v1146_v19 }
 0x21e PF: > { %s20_s11 = sadd.s32 1, %s1586_s11   ;;  %s1917_s30 = smov %s1582_s10 }
 0x21f   : > { %p17_p5 = scmp.ge.s32.totalorder %s20_s11, 4   ;;  %s1918_s10 = smov %s1920_s12 }
 0x221   :  { %19 = sbr.rel (!%p17_p5) target bundleno = 2 (0x2), region = 113 }

</bundles_post_ra>
